<compile_context>
chip_gen: v7x
topology: tpu7x:2x2x1
jax: 0.10.0
libtpu: 0.0.40
codegen_flags: <defaults>
</compile_context>

<pallas_src>
import functools

import jax
import jax.numpy as jnp
from jax.experimental import pallas as pl
from jax.experimental.pallas import tpu as pltpu

EMBED_DIM = 768
NUM_CLASSES = 2
LN_EPS = 1e-5
N_PAD = 128          # padded matmul width (MXU lane granularity); VMEM-only
MAX_TILE_B = 1024    # batch rows per grid step


def mlp_head_kernel(x_ref, w_ref, b_ref, o_ref):
    # x_ref: (TILE_B, D)   w_ref: (D, N_PAD) = gamma-folded weight (resident)
    # b_ref: (1, NUM_CLASSES) = beta-folded bias (resident)
    # o_ref: (TILE_B, NUM_CLASSES)
    x = x_ref[...].astype(jnp.float32)

    # One-pass LayerNorm moments (biased variance, eps inside rsqrt) — matches
    # PyTorch nn.LayerNorm; E[x^2]-mean^2 lets both reductions overlap on XLU.
    inv_d = jnp.float32(1.0 / EMBED_DIM)
    sum_x = jnp.sum(x, axis=-1, keepdims=True)
    sum_x2 = jnp.sum(x * x, axis=-1, keepdims=True)
    mean = sum_x * inv_d
    var = sum_x2 * inv_d - mean * mean
    xn = (x - mean) * jax.lax.rsqrt(var + LN_EPS)

    # Linear with folded affine: (xn * gamma + beta) @ W + b == xn @ W' + b'.
    out = jnp.dot(xn, w_ref[...], preferred_element_type=jnp.float32)
    o_ref[...] = (out[:, :NUM_CLASSES] + b_ref[...]).astype(o_ref.dtype)


def _round_up(n, m):
    return ((n + m - 1) // m) * m


def _pick_tile_b(batch):
    """Large tiles for HBM efficiency; keep >=2 grid steps when batch allows."""
    if batch <= 16:
        return max(8, _round_up(batch, 8))
    return int(min(MAX_TILE_B, _round_up(pl.cdiv(batch, 2), 8)))


@functools.partial(jax.jit, static_argnames=("tile_b",))
def _mlp_head_impl(x, w_folded, b_folded, *, tile_b):
    B, D = x.shape
    assert D == EMBED_DIM, D
    grid = (pl.cdiv(B, tile_b),)  # ragged final block handled by Pallas masking

    return pl.pallas_call(
        mlp_head_kernel,
        out_shape=jax.ShapeDtypeStruct((B, NUM_CLASSES), x.dtype),
        grid_spec=pltpu.PrefetchScalarGridSpec(
            num_scalar_prefetch=0,
            grid=grid,
            in_specs=[
                pl.BlockSpec((tile_b, D), lambda i: (i, 0)),          # x (streamed)
                pl.BlockSpec((D, N_PAD), lambda i: (0, 0)),           # W' (resident)
                pl.BlockSpec((1, NUM_CLASSES), lambda i: (0, 0)),     # b' (resident)
            ],
            out_specs=pl.BlockSpec((tile_b, NUM_CLASSES), lambda i: (i, 0)),
        ),
        compiler_params=pltpu.CompilerParams(
            dimension_semantics=("parallel",),
            vmem_limit_bytes=32 * 1024 * 1024,
        ),
    )(x, w_folded, b_folded)


def mlp_head(x, w_folded, b_folded):
    """LayerNorm(768) -> Linear(768, 2).  x: (B, 768)."""
    tile_b = _pick_tile_b(x.shape[0])
    return _mlp_head_impl(x, w_folded, b_folded, tile_b=tile_b)


def fold_params(gamma, beta, w, b):
    """Fold the LayerNorm affine into the linear layer (done once, host side).

    gamma, beta: (D,), w: (D, NUM_CLASSES), b: (NUM_CLASSES,)
    Returns w_folded: (D, N_PAD) f32, b_folded: (1, NUM_CLASSES) f32.
    """
    gamma = gamma.astype(jnp.float32)
    beta = beta.astype(jnp.float32)
    w = w.astype(jnp.float32)
    b = b.astype(jnp.float32)
    w_prime = gamma[:, None] * w                      # (D, NUM_CLASSES)
    b_prime = beta @ w + b                            # (NUM_CLASSES,)
    w_folded = jnp.zeros((EMBED_DIM, N_PAD), jnp.float32).at[:, :NUM_CLASSES].set(w_prime)
    b_folded = b_prime.reshape(1, NUM_CLASSES)
    return w_folded, b_folded


def init_params(key):
    """Parameter shapes matching the PyTorch module (non-trivial gamma/beta so
    the affine folding is actually exercised by the self-test)."""
    k_w, k_b, k_g, k_be = jax.random.split(key, 4)
    gamma = 1.0 + 0.1 * jax.random.normal(k_g, (EMBED_DIM,), jnp.float32)
    beta = 0.05 * jax.random.normal(k_be, (EMBED_DIM,), jnp.float32)
    bound = 1.0 / (EMBED_DIM ** 0.5)
    w = jax.random.uniform(k_w, (EMBED_DIM, NUM_CLASSES), jnp.float32,
                           minval=-bound, maxval=bound)
    b = jax.random.uniform(k_b, (NUM_CLASSES,), jnp.float32,
                           minval=-bound, maxval=bound)
    return gamma, beta, w, b


def reference(x, gamma, beta, w, b):
    x = x.astype(jnp.float32)
    mean = jnp.mean(x, axis=-1, keepdims=True)
    var = jnp.mean((x - mean) ** 2, axis=-1, keepdims=True)
    xn = (x - mean) / jnp.sqrt(var + LN_EPS)
    y = xn * gamma + beta
    return y @ w + b


if __name__ == "__main__":
    key = jax.random.PRNGKey(0)
    k_x1, k_x2, k_p = jax.random.split(key, 3)
    gamma, beta, w, b = init_params(k_p)
    w_folded, b_folded = fold_params(gamma, beta, w, b)

    # Case 1: small aligned batch.
    B1 = 4
    x1 = jax.random.normal(k_x1, (B1, EMBED_DIM), jnp.float32)
    out1 = jax.block_until_ready(mlp_head(x1, w_folded, b_folded))
    ref1 = reference(x1, gamma, beta, w, b)
    assert out1.shape == (B1, NUM_CLASSES), out1.shape
    assert jnp.allclose(out1, ref1, atol=1e-3, rtol=1e-3), \
        float(jnp.max(jnp.abs(out1 - ref1)))

    # Case 2: ragged multi-step batch (exercises cdiv grid + partial final block).
    B2 = 13
    x2 = jax.random.normal(k_x2, (B2, EMBED_DIM), jnp.float32)
    out2 = jax.block_until_ready(mlp_head(x2, w_folded, b_folded))
    ref2 = reference(x2, gamma, beta, w, b)
    assert out2.shape == (B2, NUM_CLASSES), out2.shape
    assert jnp.allclose(out2, ref2, atol=1e-3, rtol=1e-3), \
        float(jnp.max(jnp.abs(out2 - ref2)))

    print("KERNEL_OK")
</pallas_src>

<mosaic_0001>
module attributes {stable_mosaic.version = 11 : i64} {
  func.func @mlp_head_kernel(%arg0: i32, %arg1: memref<8x768xf32, #tpu.memory_space<vmem>>, %arg2: memref<768x128xf32, #tpu.memory_space<vmem>>, %arg3: memref<1x2xf32, #tpu.memory_space<vmem>>, %arg4: memref<8x2xf32, #tpu.memory_space<vmem>>) attributes {dimension_semantics = [#tpu.dimension_semantics<parallel>], iteration_bounds = array<i64: 1>, scalar_prefetch = 0 : i64, scratch_operands = 0 : i64, tpu.core_type = #tpu.core_type<tc>, window_params = [{transform_indices = @transform_0, window_bounds = array<i64: 8, 768>}, {pipeline_mode = #tpu.pipeline_mode<synchronous>, transform_indices = @transform_1, window_bounds = array<i64: 768, 128>}, {pipeline_mode = #tpu.pipeline_mode<synchronous>, transform_indices = @transform_2, window_bounds = array<i64: 1, 2>}, {transform_indices = @transform_3, window_bounds = array<i64: 8, 2>}]} {
    %c0 = arith.constant 0 : index
    %c0_0 = arith.constant 0 : index
    %0 = vector.load %arg1[%c0, %c0_0] : memref<8x768xf32, #tpu.memory_space<vmem>>, vector<8x768xf32>
    %cst = arith.constant dense<0.000000e+00> : vector<8xf32>
    %1 = vector.multi_reduction <add>, %0, %cst [1] : vector<8x768xf32> to vector<8xf32>
    %2 = vector.shape_cast %1 : vector<8xf32> to vector<8x1xf32>
    %3 = arith.mulf %0, %0 : vector<8x768xf32>
    %cst_1 = arith.constant dense<0.000000e+00> : vector<8xf32>
    %4 = vector.multi_reduction <add>, %3, %cst_1 [1] : vector<8x768xf32> to vector<8xf32>
    %5 = vector.shape_cast %4 : vector<8xf32> to vector<8x1xf32>
    %cst_2 = arith.constant 0.00130208337 : f32
    %6 = vector.broadcast %cst_2 : f32 to vector<8x1xf32>
    %7 = arith.mulf %2, %6 : vector<8x1xf32>
    %cst_3 = arith.constant 0.00130208337 : f32
    %8 = vector.broadcast %cst_3 : f32 to vector<8x1xf32>
    %9 = arith.mulf %5, %8 : vector<8x1xf32>
    %10 = arith.mulf %7, %7 : vector<8x1xf32>
    %11 = arith.subf %9, %10 : vector<8x1xf32>
    %12 = vector.broadcast %7 : vector<8x1xf32> to vector<8x768xf32>
    %13 = arith.subf %0, %12 : vector<8x768xf32>
    %cst_4 = arith.constant 9.99999974E-6 : f32
    %14 = vector.broadcast %cst_4 : f32 to vector<8x1xf32>
    %15 = arith.addf %11, %14 : vector<8x1xf32>
    %16 = math.rsqrt %15 : vector<8x1xf32>
    %17 = vector.broadcast %16 : vector<8x1xf32> to vector<8x768xf32>
    %18 = arith.mulf %13, %17 : vector<8x768xf32>
    %c0_5 = arith.constant 0 : index
    %c0_6 = arith.constant 0 : index
    %19 = vector.load %arg2[%c0_5, %c0_6] : memref<768x128xf32, #tpu.memory_space<vmem>>, vector<768x128xf32>
    %cst_7 = arith.constant dense<0.000000e+00> : vector<8x128xf32>
    %20 = tpu.matmul %18, %19, %cst_7 {dimension_numbers = #tpu.dot_dimension_numbers<[1], [0], [0], [1], [0, 0, 1, 1], [], []>} : vector<8x768xf32>, vector<768x128xf32>, vector<8x128xf32> -> vector<8x128xf32>
    %21 = vector.extract_strided_slice %20 {offsets = [0, 0], sizes = [8, 2], strides = [1, 1]} : vector<8x128xf32> to vector<8x2xf32>
    %c0_8 = arith.constant 0 : index
    %c0_9 = arith.constant 0 : index
    %22 = vector.load %arg3[%c0_8, %c0_9] : memref<1x2xf32, #tpu.memory_space<vmem>>, vector<1x2xf32>
    %23 = vector.broadcast %22 : vector<1x2xf32> to vector<8x2xf32>
    %24 = arith.addf %21, %23 : vector<8x2xf32>
    %c0_10 = arith.constant 0 : index
    %c0_11 = arith.constant 0 : index
    %25 = vector.load %arg4[%c0_10, %c0_11] : memref<8x2xf32, #tpu.memory_space<vmem>>, vector<8x2xf32>
    tpu.vector_store %arg4[%c0_10, %c0_11], %24 {strides = array<i32>} : memref<8x2xf32, #tpu.memory_space<vmem>>, vector<8x2xf32>,
    return
  }
  func.func @transform_0(%arg0: i32) -> (i32, i32) {
    %c0_i32 = arith.constant 0 : i32
    %c0_i32_0 = arith.constant 0 : i32
    return %arg0, %c0_i32 : i32, i32
  }
  func.func @transform_1(%arg0: i32) -> (i32, i32) {
    %c0_i32 = arith.constant 0 : i32
    %c0_i32_0 = arith.constant 0 : i32
    %c0_i32_1 = arith.constant 0 : i32
    return %c0_i32, %c0_i32_0 : i32, i32
  }
  func.func @transform_2(%arg0: i32) -> (i32, i32) {
    %c0_i32 = arith.constant 0 : i32
    %c0_i32_0 = arith.constant 0 : i32
    %c0_i32_1 = arith.constant 0 : i32
    return %c0_i32, %c0_i32_0 : i32, i32
  }
  func.func @transform_3(%arg0: i32) -> (i32, i32) {
    %c0_i32 = arith.constant 0 : i32
    %c0_i32_0 = arith.constant 0 : i32
    return %arg0, %c0_i32 : i32, i32
  }
}

</mosaic_0001>

<bundles_post_ra>
// kernel: _mlp_head_impl.1
= control target key start
LH: loop header
LB: loop body
LE: loop exit
PB: predicated region body
PF: predicated region fallthrough
CT: control target
= control target key end

     0   :  { %8 = vsyncpa [#allocation3], 0  ;;  %s905_s0 = inlined_call_operand.hbm [shape: f32[4,768], index: 0, kind: input, shape index: {}]   ;;  %s906_s1 = inlined_call_operand.hbm [shape: f32[768,128], index: 1, kind: input, shape index: {}]   ;;  %s907_s2 = inlined_call_operand.vmem [shape: f32[1,2], index: 2, kind: input, shape index: {}]   ;;  %s908_s3 = inlined_call_operand.vmem [shape: f32[4,2], index: 3, kind: output, shape index: {}]  }
   0x1   :  { %9 = vsyncpa [#allocation5], 0 }
   0x2   :  { %14 = vsyncadd [#allocation3], 384  ;;  %s797_s12 = smov [#allocation2]   ;;  %s749_s16 = scalar_lea.hbm %s905_s0, 384 }
   0x3   :  { %s15_s13 = sshll.u32 %s797_s12, 4  ;;  %p750_p0 = scmp.ne.s32.totalorder %s905_s0, %s749_s16  ;;  %s16_s13 = int_to_ptr.vmem [resolvable:$true] %s15_s13 }
   0x4   :  { %p753_p1 = scmp.lt.u32.totalorder %s749_s16, %s905_s0 }
   0x6   :  { %p755_p2 = pnand %p753_p1, %p750_p0 }
   0x8   :  { %758 = shalt.err (!%p755_p2)
}
   0x9   :  { %s759_s21 = scalar_lea.vmem %s16_s13, 384  ;;  %s763_s22 = scalar_lea.vmem %s16_s13, 768 }
   0xa   :  { %p760_p3 = scmp.ne.s32.totalorder %s16_s13, %s759_s21  ;;  %p764_p4 = scmp.lt.s32.totalorder %s16_s13, %s16_s13 }
   0xb   :  { %p765_p5 = scmp.lt.s32.totalorder %s763_s22, %s759_s21 }
   0xd   :  { %p766_p6 = por %p765_p5, %p764_p4 }
   0xf   :  { %p767_p7 = pnand %p766_p6, %p760_p3 }
  0x11   :  { %770 = shalt.err (!%p767_p7)
}
  0x12   :  { %s798_s23 = smov 384   ;;  %s799_s24 = smov 24  }
  0x13   :  { %21 = dma.hbm_to_vmem [thread:$0]  %s905_s0, 384, %s16_s13, [#allocation3], %s798_s23, %s798_s23, %s799_s24  }
  0x14   :  { %s800_s27 = smov [#allocation4]   ;;  %s771_s4 = scalar_lea.hbm %s906_s1, 12288 }
  0x15   :  { %s27_s28 = sshll.u32 %s800_s27, 4  ;;  %p772_p8 = scmp.ne.s32.totalorder %s906_s1, %s771_s4  ;;  %s28_s28 = int_to_ptr.vmem [resolvable:$true] %s27_s28 }
  0x16   :  { %p775_p9 = scmp.lt.u32.totalorder %s771_s4, %s906_s1 }
  0x18   :  { %p777_p10 = pnand %p775_p9, %p772_p8 }
  0x1a   :  { %780 = shalt.err (!%p777_p10)
}
  0x1b   :  { %s781_s9 = scalar_lea.vmem %s28_s28, 12288  ;;  %p786_p12 = scmp.lt.s32.totalorder %s28_s28, %s28_s28 }
  0x1c   :  { %p782_p11 = scmp.ne.s32.totalorder %s28_s28, %s781_s9  ;;  %p787_p13 = scmp.lt.s32.totalorder %s781_s9, %s781_s9 }
  0x1e   :  { %p788_p0 = por %p787_p13, %p786_p12 }
  0x20   :  { %p789_p1 = pnand %p788_p0, %p782_p11 }
  0x22   :  { %792 = shalt.err (!%p789_p1)
}
  0x23   :  { %s801_s0 = smov 128   ;;  %s802_s10 = smov 8  }
  0x24   :  { %33 = dma.hbm_to_vmem [thread:$0]  %s906_s1, 12288, %s28_s28, [#allocation5], %s801_s0, %s801_s0, %s802_s10  }
  0x25   :  { %793 = dma.done.wait [#allocation3], 768  }
  0x26   :  { %794 = vsyncadd [#allocation3], 4294966528 }
  0x27   :  { %795 = dma.done.wait [#allocation5], 12288  }
  0x28   :  { %796 = vsyncadd [#allocation5], 4294955008  ;;  %v849_v0 = vld [vmem:[#allocation2] sm:$0xff]  ;;  %v851_v1 = vld [vmem:[#allocation2 + $0x8] sm:$0xff]  ;;  %vm488_vm0 = vcmask 15360  }
  0x29   :  { %v853_v2 = vld [vmem:[#allocation2 + $0x10] sm:$0xff]  ;;  %v855_v3 = vld [vmem:[#allocation2 + $0x18] sm:$0xff]  ;;  %v857_v4 = vld [vmem:[#allocation2 + $0x20] sm:$0xff]  ;;  %v73_v6 = vmul.f32 %v849_v0, %v849_v0  ;;  %v74_v7 = vmul.f32 %v851_v1, %v851_v1 }
  0x2a   :  { %v859_v5 = vld [vmem:[#allocation2 + $0x28] sm:$0xff]  ;;  %v54_v8 = vcombine.low %v849_v0, %v855_v3  ;;  %v55_v9 = vcombine.high %v849_v0, %v855_v3  ;;  %v56_v10 = vcombine.low %v851_v1, %v857_v4  ;;  %v172_v11 = vld [vmem:[#allocation4 + $0x80] sm:$0xff]  ;;  %v173_v12 = vld [vmem:[#allocation4 + $0x88] sm:$0xff]  ;;  %v75_v14 = vmul.f32 %v853_v2, %v853_v2 }
  0x2b   :  { %v156_v13 = vld [vmem:[#allocation4] sm:$0xff]  ;;  %v76_v15 = vmul.f32 %v855_v3, %v855_v3  ;;  %v77_v16 = vmul.f32 %v857_v4, %v857_v4  ;;  %v157_v17 = vld [vmem:[#allocation4 + $0x8] sm:$0xff]  ;;  %v57_v20 = vcombine.high %v851_v1, %v857_v4  ;;  %v637_v22 = vpack.c.bf16 %v173_v12, %v172_v11  ;;  %v174_v26 = vld [vmem:[#allocation4 + $0x90] sm:$0xff] }
  0x2c   :  { %v204_v18 = vld [vmem:[#allocation4 + $0x180] sm:$0xff]  ;;  %v205_v19 = vld [vmem:[#allocation4 + $0x188] sm:$0xff]  ;;  %v66_v21 = vadd.f32 %v55_v9, %v54_v8  ;;  %v639_v23 = vpack.c.bf16 %v157_v17, %v156_v13  ;;  %v78_v27 = vmul.f32 %v859_v5, %v859_v5  ;;  %v175_v31 = vld [vmem:[#allocation4 + $0x98] sm:$0xff]  ;;  %v58_v32 = vcombine.low %v853_v2, %v859_v5 }
  0x2d   :  { %v188_v24 = vld [vmem:[#allocation4 + $0x100] sm:$0xff]  ;;  %v189_v25 = vld [vmem:[#allocation4 + $0x108] sm:$0xff]  ;;  %v85_v28 = vcombine.low %v73_v6, %v76_v15  ;;  %v86_v29 = vcombine.high %v73_v6, %v76_v15  ;;  %v87_v30 = vcombine.low %v74_v7, %v77_v16  ;;  %638 = vmatprep.subr.bf16.mxu0 %v637_v22  ;;  %v669_v34 = vpack.c.bf16 %v205_v19, %v204_v18  ;;  %v158_v49 = vld [vmem:[#allocation4 + $0x10] sm:$0xff] }
  0x2e   :  { %v67_v33 = vadd.f32 %v66_v21, %v56_v10  ;;  %v88_v35 = vcombine.high %v74_v7, %v77_v16  ;;  %640 = vmatpush3.bf16.msra.mxu0 %v639_v23  ;;  %v671_v37 = vpack.c.bf16 %v189_v25, %v188_v24  ;;  %v641_v38 = vpack.c.bf16 %v175_v31, %v174_v26  ;;  %v159_v50 = vld [vmem:[#allocation4 + $0x18] sm:$0xff]  ;;  %v206_v51 = vld [vmem:[#allocation4 + $0x190] sm:$0xff]  ;;  %v176_v58 = vld [vmem:[#allocation4 + $0xa0] sm:$0xff] }
  0x2f   :  { %v97_v36 = vadd.f32 %v86_v29, %v85_v28  ;;  %v59_v39 = vcombine.high %v853_v2, %v859_v5  ;;  %670 = vmatprep.subr.bf16.mxu1 %v669_v34  ;;  %v89_v41 = vcombine.low %v75_v14, %v78_v27  ;;  %v90_v44 = vcombine.high %v75_v14, %v78_v27  ;;  %v207_v53 = vld [vmem:[#allocation4 + $0x198] sm:$0xff]  ;;  %v190_v54 = vld [vmem:[#allocation4 + $0x110] sm:$0xff]  ;;  %v177_v59 = vld [vmem:[#allocation4 + $0xa8] sm:$0xff] }
  0x30   :  { %v68_v40 = vadd.f32 %v67_v33, %v57_v20  ;;  %672 = vmatpush3.bf16.msra.mxu1 %v671_v37  ;;  %642 = vmatprep.subr.bf16.mxu0 %v641_v38  ;;  %v643_v52 = vpack.c.bf16 %v159_v50, %v158_v49  ;;  %v191_v55 = vld [vmem:[#allocation4 + $0x118] sm:$0xff]  ;;  %v673_v56 = vpack.c.bf16 %v207_v53, %v206_v51  ;;  %v160_v61 = vld [vmem:[#allocation4 + $0x20] sm:$0xff]  ;;  %v161_v62 = vld [vmem:[#allocation4 + $0x28] sm:$0xff] }
  0x31   :  { %v98_v42 = vadd.f32 %v97_v36, %v87_v30  ;;  %v675_v57 = vpack.c.bf16 %v191_v55, %v190_v54  ;;  %v645_v60 = vpack.c.bf16 %v177_v59, %v176_v58  ;;  %v208_v63 = vld [vmem:[#allocation4 + $0x1a0] sm:$0xff]  ;;  %v647_v6 = vpack.c.bf16 %v161_v62, %v160_v61  ;;  %v209_v7 = vld [vmem:[#allocation4 + $0x1a8] sm:$0xff]  ;;  %v178_v12 = vld [vmem:[#allocation4 + $0xb0] sm:$0xff] }
  0x32   :  { %v69_v43 = vadd.f32 %v68_v40, %v58_v32  ;;  %644 = vmatpush3.bf16.msra.mxu0 %v643_v52  ;;  %674 = vmatprep.subr.bf16.mxu1 %v673_v56  ;;  %v192_v8 = vld [vmem:[#allocation4 + $0x120] sm:$0xff]  ;;  %v193_v9 = vld [vmem:[#allocation4 + $0x128] sm:$0xff]  ;;  %v677_v10 = vpack.c.bf16 %v209_v7, %v208_v63  ;;  %v179_v13 = vld [vmem:[#allocation4 + $0xb8] sm:$0xff] }
  0x33   :  { %v99_v45 = vadd.f32 %v98_v42, %v88_v35  ;;  %646 = vmatprep.subr.bf16.mxu0 %v645_v60  ;;  %v679_v11 = vpack.c.bf16 %v193_v9, %v192_v8  ;;  %v649_v14 = vpack.c.bf16 %v179_v13, %v178_v12  ;;  %v162_v15 = vld [vmem:[#allocation4 + $0x30] sm:$0xff]  ;;  %v163_v16 = vld [vmem:[#allocation4 + $0x38] sm:$0xff]  ;;  %v180_v24 = vld [vmem:[#allocation4 + $0xc0] sm:$0xff] }
  0x34   :  { %v70_v46 = vadd.f32 %v69_v43, %v59_v39  ;;  %676 = vmatpush3.bf16.msra.mxu1 %v675_v57  ;;  %v210_v17 = vld [vmem:[#allocation4 + $0x1b0] sm:$0xff]  ;;  %v651_v18 = vpack.c.bf16 %v163_v16, %v162_v15  ;;  %v211_v19 = vld [vmem:[#allocation4 + $0x1b8] sm:$0xff]  ;;  %v181_v25 = vld [vmem:[#allocation4 + $0xc8] sm:$0xff] }
  0x35   :  { %v100_v47 = vadd.f32 %v99_v45, %v89_v41  ;;  %678 = vmatprep.subr.bf16.mxu1 %v677_v10  ;;  %v194_v20 = vld [vmem:[#allocation4 + $0x130] sm:$0xff]  ;;  %v195_v21 = vld [vmem:[#allocation4 + $0x138] sm:$0xff]  ;;  %v681_v22 = vpack.c.bf16 %v211_v19, %v210_v17  ;;  %v653_v26 = vpack.c.bf16 %v181_v25, %v180_v24  ;;  %v164_v27 = vld [vmem:[#allocation4 + $0x40] sm:$0xff]  ;;  %v112_v19 = vlaneseq }
  0x36   :  { %71 = vadd.xlane.f32.xlu0 %v70_v46  ;;  %648 = vmatpush3.bf16.msra.mxu0 %v647_v6  ;;  %v683_v23 = vpack.c.bf16 %v195_v21, %v194_v20  ;;  %v165_v28 = vld [vmem:[#allocation4 + $0x48] sm:$0xff]  ;;  %v212_v29 = vld [vmem:[#allocation4 + $0x1c0] sm:$0xff]  ;;  %v182_v36 = vld [vmem:[#allocation4 + $0xd0] sm:$0xff]  ;;  %v803_v21 = vmov 839922192  }
  0x37   :  { %v101_v48 = vadd.f32 %v100_v47, %v90_v44  ;;  %650 = vmatprep.subr.bf16.mxu0 %v649_v14  ;;  %v655_v30 = vpack.c.bf16 %v165_v28, %v164_v27  ;;  %v213_v31 = vld [vmem:[#allocation4 + $0x1c8] sm:$0xff]  ;;  %v196_v32 = vld [vmem:[#allocation4 + $0x140] sm:$0xff]  ;;  %v183_v37 = vld [vmem:[#allocation4 + $0xd8] sm:$0xff] }
  0x38   :  { %680 = vmatpush3.bf16.msra.mxu1 %v679_v11  ;;  %v197_v33 = vld [vmem:[#allocation4 + $0x148] sm:$0xff]  ;;  %v685_v34 = vpack.c.bf16 %v213_v31, %v212_v29  ;;  %v166_v38 = vld [vmem:[#allocation4 + $0x50] sm:$0xff]  ;;  %v657_v39 = vpack.c.bf16 %v183_v37, %v182_v36  ;;  %v167_v40 = vld [vmem:[#allocation4 + $0x58] sm:$0xff]  ;;  %v113_v29 = vshrl.u32 %v112_v19, 7 }
  0x39   :  { %682 = vmatprep.subr.bf16.mxu1 %v681_v22  ;;  %v687_v35 = vpack.c.bf16 %v197_v33, %v196_v32  ;;  %v214_v41 = vld [vmem:[#allocation4 + $0x1d0] sm:$0xff]  ;;  %v215_v42 = vld [vmem:[#allocation4 + $0x1d8] sm:$0xff]  ;;  %v659_v43 = vpack.c.bf16 %v167_v40, %v166_v38  ;;  %v184_v47 = vld [vmem:[#allocation4 + $0xe0] sm:$0xff]  ;;  %v110_v22 = vunpack.c.l.s4 %v803_v21 }
  0x3a   :  { %102 = vadd.xlane.f32.xlu0 %v101_v48  ;;  %652 = vmatpush3.bf16.msra.mxu0 %v651_v18  ;;  %v689_v44 = vpack.c.bf16 %v215_v42, %v214_v41  ;;  %v198_v45 = vld [vmem:[#allocation4 + $0x150] sm:$0xff]  ;;  %v199_v46 = vld [vmem:[#allocation4 + $0x158] sm:$0xff]  ;;  %v185_v49 = vld [vmem:[#allocation4 + $0xe8] sm:$0xff] }
  0x3b   :  { %654 = vmatprep.subr.bf16.mxu0 %v653_v26  ;;  %v691_v48 = vpack.c.bf16 %v199_v46, %v198_v45  ;;  %v168_v50 = vld [vmem:[#allocation4 + $0x60] sm:$0xff]  ;;  %v169_v51 = vld [vmem:[#allocation4 + $0x68] sm:$0xff]  ;;  %v661_v52 = vpack.c.bf16 %v185_v49, %v184_v47  ;;  %v186_v59 = vld [vmem:[#allocation4 + $0xf0] sm:$0xff]  ;;  %v111_v28 = vunpack.c.0.s8 %v110_v22 }
  0x3c   :  { %684 = vmatpush3.bf16.msra.mxu1 %v683_v23  ;;  %v216_v53 = vld [vmem:[#allocation4 + $0x1e0] sm:$0xff]  ;;  %v217_v54 = vld [vmem:[#allocation4 + $0x1e8] sm:$0xff]  ;;  %v663_v56 = vpack.c.bf16 %v169_v51, %v168_v50  ;;  %v187_v60 = vld [vmem:[#allocation4 + $0xf8] sm:$0xff]  ;;  %v804_v23 = vmov 1985246804  }
  0x3d   :  { %686 = vmatprep.subr.bf16.mxu1 %v685_v34  ;;  %v200_v55 = vld [vmem:[#allocation4 + $0x160] sm:$0xff]  ;;  %v693_v57 = vpack.c.bf16 %v217_v54, %v216_v53  ;;  %v201_v58 = vld [vmem:[#allocation4 + $0x168] sm:$0xff]  ;;  %v665_v61 = vpack.c.bf16 %v187_v60, %v186_v59  ;;  %v170_v62 = vld [vmem:[#allocation4 + $0x70] sm:$0xff]  ;;  %v117_v24 = vunpack.c.l.s4 %v804_v23  ;;  %v114_v32 = vsub.s32 %v111_v28, %v113_v29 }
  0x3e   :  { %656 = vmatpush3.bf16.msra.mxu0 %v655_v30  ;;  %v171_v63 = vld [vmem:[#allocation4 + $0x78] sm:$0xff]  ;;  %v218_v6 = vld [vmem:[#allocation4 + $0x1f0] sm:$0xff]  ;;  %v695_v7 = vpack.c.bf16 %v201_v58, %v200_v55  ;;  %v236_v14 = vld [vmem:[#allocation4 + $0x280] sm:$0xff] }
  0x3f   :  { %658 = vmatprep.subr.bf16.mxu0 %v657_v39  ;;  %v219_v8 = vld [vmem:[#allocation4 + $0x1f8] sm:$0xff]  ;;  %v202_v10 = vld [vmem:[#allocation4 + $0x170] sm:$0xff]  ;;  %v667_v12 = vpack.c.bf16 %v171_v63, %v170_v62  ;;  %v237_v15 = vld [vmem:[#allocation4 + $0x288] sm:$0xff]  ;;  %v118_v30 = vunpack.c.0.s8 %v117_v24 }
  0x40   :  { %688 = vmatpush3.bf16.msra.mxu1 %v687_v35  ;;  %v697_v9 = vpack.c.bf16 %v219_v8, %v218_v6  ;;  %v203_v11 = vld [vmem:[#allocation4 + $0x178] sm:$0xff]  ;;  %v701_v16 = vpack.c.bf16 %v237_v15, %v236_v14  ;;  %v238_v51 = vld [vmem:[#allocation4 + $0x290] sm:$0xff]  ;;  %v240_v58 = vld [vmem:[#allocation4 + $0x2a0] sm:$0xff] }
  0x41   :  { %690 = vmatprep.subr.bf16.mxu1 %v689_v44  ;;  %v699_v13 = vpack.c.bf16 %v203_v11, %v202_v10  ;;  %v121_v33 = vsub.s32 %v118_v30, %v113_v29  ;;  %v221_v44 = vld [vmem:[#allocation4 + $0x208] sm:$0xff]  ;;  %v224_v62 = vld [vmem:[#allocation4 + $0x220] sm:$0xff]  ;;  %v242_v6 = vld [vmem:[#allocation4 + $0x2b0] sm:$0xff] }
  0x42   :  { %660 = vmatpush3.bf16.msra.mxu0 %v659_v43  ;;  %v220_v43 = vld [vmem:[#allocation4 + $0x200] sm:$0xff]  ;;  %v241_v59 = vld [vmem:[#allocation4 + $0x2a8] sm:$0xff]  ;;  %v226_v10 = vld [vmem:[#allocation4 + $0x230] sm:$0xff] }
  0x43   :  { %662 = vmatprep.subr.bf16.mxu0 %v661_v52  ;;  %v703_v52 = vpack.c.bf16 %v221_v44, %v220_v43  ;;  %v225_v63 = vld [vmem:[#allocation4 + $0x228] sm:$0xff]  ;;  %v227_v11 = vld [vmem:[#allocation4 + $0x238] sm:$0xff]  ;;  %v230_v22 = vld [vmem:[#allocation4 + $0x250] sm:$0xff] }
  0x44   :  { %692 = vmatpush3.bf16.msra.mxu1 %v691_v48  ;;  %v711_v8 = vpack.c.bf16 %v225_v63, %v224_v62  ;;  %v715_v14 = vpack.c.bf16 %v227_v11, %v226_v10  ;;  %v247_v19 = vld [vmem:[#allocation4 + $0x2d8] sm:$0xff]  ;;  %v248_v24 = vld [vmem:[#allocation4 + $0x2e0] sm:$0xff]  ;;  %v233_v29 = vld [vmem:[#allocation4 + $0x268] sm:$0xff] }
  0x45   :  { %694 = vmatprep.subr.bf16.mxu1 %v693_v57  ;;  %v222_v57 = vld [vmem:[#allocation4 + $0x210] sm:$0xff]  ;;  %v231_v23 = vld [vmem:[#allocation4 + $0x258] sm:$0xff]  ;;  %v232_v28 = vld [vmem:[#allocation4 + $0x260] sm:$0xff] }
  0x46   :  { %664 = vmatpush3.bf16.msra.mxu0 %v663_v56  ;;  %v250_v30 = vld [vmem:[#allocation4 + $0x2f0] sm:$0xff] }
  0x47   :  { %666 = vmatprep.subr.bf16.mxu0 %v665_v61  ;;  %v709_v61 = vpack.c.bf16 %v241_v59, %v240_v58 }
  0x48   :  { %696 = vmatpush3.bf16.msra.mxu1 %v695_v7  ;;  %v243_v7 = vld [vmem:[#allocation4 + $0x2b8] sm:$0xff] }
  0x49   :  { %698 = vmatprep.subr.bf16.mxu1 %v697_v9  ;;  %v713_v9 = vpack.c.bf16 %v243_v7, %v242_v6 }
  0x4a   :  { %668 = vmatpush3.bf16.msra.mxu0 %v667_v12  ;;  %v244_v12 = vld [vmem:[#allocation4 + $0x2c0] sm:$0xff] }
  0x4b   :  { %702 = vmatprep.subr.bf16.mxu0 %v701_v16  ;;  %v228_v16 = vld [vmem:[#allocation4 + $0x240] sm:$0xff] }
  0x4c   :  { %700 = vmatpush3.bf16.msra.mxu1 %v699_v13  ;;  %v245_v13 = vld [vmem:[#allocation4 + $0x2c8] sm:$0xff] }
  0x4d   :  { %v717_v15 = vpack.c.bf16 %v245_v13, %v244_v12 }
  0xc3   :  { %v72_v17 = vpop.xlane.xlu0 %71 }
  0xc4   :  { %v104_v18 = vmul.f32 0.0013020834, %v72_v17  ;;  %v229_v17 = vld [vmem:[#allocation4 + $0x248] sm:$0xff] }
  0xc6   :  { %v106_v25 = vmul.f32 %v104_v18, %v104_v18  ;;  %v115_v34 = vrot.slane %v104_v18, %v114_v32  ;;  %v122_v35 = vrot.slane %v104_v18, %v121_v33  ;;  %v246_v18 = vld [vmem:[#allocation4 + $0x2d0] sm:$0xff] }
  0xc7   :  { %v103_v20 = vpop.xlane.xlu0 %102  ;;  %v721_v21 = vpack.c.bf16 %v247_v19, %v246_v18 }
  0xc8   :  { %v105_v26 = vmul.f32 0.0013020834, %v103_v20  ;;  %v125_v37 = vsub.f32 %v849_v0, %v115_v34  ;;  %v128_v38 = vsub.f32 %v855_v3, %v122_v35  ;;  %v126_v41 = vsub.f32 %v851_v1, %v115_v34  ;;  %v239_v0 = vld [vmem:[#allocation4 + $0x298] sm:$0xff] }
  0xc9   :  { %v129_v42 = vsub.f32 %v857_v4, %v122_v35  ;;  %v127_v45 = vsub.f32 %v853_v2, %v115_v34  ;;  %v130_v46 = vsub.f32 %v859_v5, %v122_v35  ;;  %v705_v56 = vpack.c.bf16 %v239_v0, %v238_v51  ;;  %v223_v2 = vld [vmem:[#allocation4 + $0x218] sm:$0xff]  ;;  %v234_v34 = vld [vmem:[#allocation4 + $0x270] sm:$0xff] }
  0xca   :  { %v107_v27 = vsub.f32 %v105_v26, %v106_v25  ;;  %v707_v60 = vpack.c.bf16 %v223_v2, %v222_v57  ;;  %v719_v20 = vpack.c.bf16 %v229_v17, %v228_v16  ;;  %v249_v25 = vld [vmem:[#allocation4 + $0x2e8] sm:$0xff]  ;;  %v723_v26 = vpack.c.bf16 %v231_v23, %v230_v22  ;;  %v235_v35 = vld [vmem:[#allocation4 + $0x278] sm:$0xff] }
  0xcc   :  { %v131_v31 = vadd.f32 1e-05, %v107_v27  ;;  %v725_v27 = vpack.c.bf16 %v249_v25, %v248_v24 }
  0xce   :  { %747 = vrsqrt.f32 %v131_v31  ;;  %v251_v31 = vld [vmem:[#allocation4 + $0x2f8] sm:$0xff] }
  0xd8   :  { %v748_v36 = vpop.eup %747 }
  0xd9   :  { %v140_v39 = vrot.slane %v748_v36, %v114_v32  ;;  %v147_v40 = vrot.slane %v748_v36, %v121_v33  ;;  %v727_v32 = vpack.c.bf16 %v233_v29, %v232_v28  ;;  %v729_v33 = vpack.c.bf16 %v251_v31, %v250_v30 }
  0xda   :  { %v731_v36 = vpack.c.bf16 %v235_v35, %v234_v34 }
  0xdb   :  { %v150_v47 = vmul.f32 %v140_v39, %v125_v37  ;;  %v153_v48 = vmul.f32 %v147_v40, %v128_v38  ;;  %v151_v49 = vmul.f32 %v140_v39, %v126_v41  ;;  %v154_v50 = vmul.f32 %v147_v40, %v129_v42 }
  0xdc   :  { %v891_v3 = vmul.f32 %v140_v39, %v127_v45  ;;  %v893_v53 = vmul.f32 %v147_v40, %v130_v46 }
  0xdd   :  { %v259_v1 = vcombine.high %v150_v47, %v153_v48  ;;  %v261_v54 = vcombine.high %v151_v49, %v154_v50  ;;  %v258_v4 = vcombine.low %v150_v47, %v153_v48  ;;  %v260_v55 = vcombine.low %v151_v49, %v154_v50  ;;  %v531_v48 = vld [vmem:[%s907_s2] ss:$0 sm:$0xff] }
  0xde   :  { %v263_v5 = vcombine.high %v891_v3, %v893_v53  ;;  %v262_v37 = vcombine.low %v891_v3, %v893_v53 }
  0xdf   :  { %334 = vmatprep.mubr.f32.mxu0 %v259_v1  ;;  %404 = vmatprep.mubr.f32.mxu1 %v261_v54 }
  0xe0   :  { %335 = vmatmul.mubr.f32.vlgmr.msra.gmra.mrb[0].mxu0 %v258_v4  ;;  %405 = vmatmul.mubr.f32.vlgmr.msra.gmra.mrb[0].mxu1 %v260_v55 }
  0xe1   :  { %704 = vmatpush3.bf16.msra.mxu0 %v703_v52  ;;  %474 = vmatprep.mubr.f32.mxu0 %v263_v5 }
  0xe2   :  { %706 = vmatprep.subr.bf16.mxu0 %v705_v56 }
  0xe5   :  { %708 = vmatpush3.bf16.msra.mxu0 %v707_v60 }
  0xe6   :  { %710 = vmatprep.subr.bf16.mxu0 %v709_v61 }
  0xe9   :  { %712 = vmatpush3.bf16.msra.mxu0 %v711_v8 }
  0xea   :  { %714 = vmatprep.subr.bf16.mxu0 %v713_v9 }
  0xed   :  { %716 = vmatpush3.bf16.msra.mxu0 %v715_v14 }
  0xee   :  { %718 = vmatprep.subr.bf16.mxu0 %v717_v15 }
  0xf1   :  { %720 = vmatpush3.bf16.msra.mxu0 %v719_v20 }
  0xf2   :  { %722 = vmatprep.subr.bf16.mxu0 %v721_v21 }
  0xf5   :  { %724 = vmatpush3.bf16.msra.mxu0 %v723_v26 }
  0xf6   :  { %726 = vmatprep.subr.bf16.mxu0 %v725_v27 }
  0xf9   :  { %728 = vmatpush3.bf16.msra.mxu0 %v727_v32 }
  0xfa   :  { %730 = vmatprep.subr.bf16.mxu0 %v729_v33 }
  0xfd   :  { %732 = vmatpush3.bf16.msra.mxu0 %v731_v36 }
 0x100   :  { %475 = vmatmul.mubr.f32.vlgmr.msra.gmra.mrb[2].mxu0 %v262_v37 }
 0x1b3   :  { %v564_v38 = vpop.f32.mrb[0].mxu0  ;;  %v599_v39 = vpop.f32.mrb[0].mxu1 }
 0x1b4   :  { %v565_v40 = vpop.f32.mrb[1].mxu0  ;;  %v600_v41 = vpop.f32.mrb[1].mxu1 }
 0x1b5   :  { %v566_v42 = vadd.f32 %v565_v40, %v564_v38  ;;  %v601_v43 = vadd.f32 %v600_v41, %v599_v39 }
 0x1b7   :  { %v407_v44 = vadd.f32 %v601_v43, %v566_v42 }
 0x1d3   :  { %v634_v45 = vpop.f32.mrb[2].mxu0 }
 0x1d4   :  { %v635_v46 = vpop.f32.mrb[3].mxu0 }
 0x1d5   :  { %v636_v47 = vadd.f32 %v635_v46, %v634_v45 }
 0x1d7   :  { %v477_v49 = vadd.f32 %v636_v47, %v407_v44 }
 0x1d9   :  { %v487_v50 = vadd.f32 %v531_v48, %v477_v49 }
 0x1db   :  { %489 = vst.msk [vmem:[#allocation6] sm:$0xff] %vm488_vm0, %v487_v50 }
 0x1e2   :  { %v507_v51 = vld [vmem:[#allocation6] sm:$0xf] }
 0x1e3   :  { %508 = vst [vmem:[%s908_s3] sm:$0xf] %v507_v51 }
 0x1e4   :  { %525 = vsyncpa [#allocation3], 1 }
 0x1e5   :  { %526 = vsyncpa [#allocation5], 1 }

</bundles_post_ra>
